<compile_context>
chip_gen: v6e
topology: v6e:2x2x1
jax: 0.10.0
libtpu: 0.0.40
codegen_flags: <defaults>
</compile_context>

<pallas_src>
import math

import jax
import jax.numpy as jnp
from jax.experimental import pallas as pl
from jax.experimental.pallas import tpu as pltpu


# ------------------------------------------------------------------------------------
# Kernel 1: hoisted input projection  Z = X @ W_ih_packed + bias   (one big MXU matmul)
# ------------------------------------------------------------------------------------
def _in_proj_kernel(x_ref, w_ref, b_ref, z_ref):
    z_ref[...] = (
        jnp.dot(x_ref[...], w_ref[...], preferred_element_type=jnp.float32)
        + b_ref[...]
    )


def _input_projection(x_2d, w_packed, b_packed):
    """x_2d: (R, Din) bf16, w_packed: (Din, 4*Hp) bf16, b_packed: (1, 4*Hp) f32."""
    R, Din = x_2d.shape
    G = w_packed.shape[1]
    Rb = math.gcd(R, 512)               # R is a multiple of 8, so Rb is too
    return pl.pallas_call(
        _in_proj_kernel,
        out_shape=jax.ShapeDtypeStruct((R, G), jnp.float32),
        grid_spec=pltpu.PrefetchScalarGridSpec(
            num_scalar_prefetch=0,
            grid=(R // Rb,),
            in_specs=[
                pl.BlockSpec((Rb, Din), lambda r: (r, 0)),
                pl.BlockSpec((Din, G), lambda r: (0, 0)),
                pl.BlockSpec((1, G), lambda r: (0, 0)),
            ],
            out_specs=pl.BlockSpec((Rb, G), lambda r: (r, 0)),
        ),
        compiler_params=pltpu.CompilerParams(
            dimension_semantics=("parallel",)),
    )(x_2d, w_packed, b_packed)


# ------------------------------------------------------------------------------------
# Kernel 2: sequential recurrence over time chunks
# ------------------------------------------------------------------------------------
def _recurrence_kernel(z_ref, whh_hbm, out_ref, h_out_ref, c_out_ref,
                       whh_vmem, dma_sem, h_sc, c_sc):
    """
    z_ref:    (Tc, Bp, 4*Hp) f32   precomputed x@W_ih^T + bias for this time chunk
    whh_hbm:  (Hp, 4*Hp) bf16      raw HBM ref (memory_space=ANY)
    out_ref:  (Tc, Bp, Hp)         per-step hidden outputs for this chunk
    h_out_ref, c_out_ref: (Bp, Hp) f32  final states
    whh_vmem: single-buffered VMEM copy of W_hh^T (filled once at chunk 0)
    h_sc, c_sc: fp32 VMEM carries
    """
    chunk = pl.program_id(0)
    Tc = z_ref.shape[0]
    Hp = h_sc.shape[-1]

    @pl.when(chunk == 0)
    def _():
        cp = pltpu.make_async_copy(whh_hbm, whh_vmem, dma_sem)
        cp.start()
        cp.wait()
        h_sc[...] = jnp.zeros_like(h_sc)
        c_sc[...] = jnp.zeros_like(c_sc)

    w_rec = whh_vmem[...]              # hoisted: loaded once per chunk

    def step(t, carry):
        h, c = carry
        z = z_ref[t] + jnp.dot(h.astype(jnp.bfloat16), w_rec,
                               preferred_element_type=jnp.float32)
        # gate slices are 128-lane aligned because Hp % 128 == 0
        i_g = jax.nn.sigmoid(z[:, 0 * Hp:1 * Hp])
        f_g = jax.nn.sigmoid(z[:, 1 * Hp:2 * Hp])
        g_g = jnp.tanh(z[:, 2 * Hp:3 * Hp])
        o_g = jax.nn.sigmoid(z[:, 3 * Hp:4 * Hp])
        c_new = f_g * c + i_g * g_g
        h_new = o_g * jnp.tanh(c_new)
        out_ref[t] = h_new.astype(out_ref.dtype)
        return h_new, c_new

    h_last, c_last = jax.lax.fori_loop(0, Tc, step,
                                       (h_sc[...], c_sc[...]), unroll=True)
    h_sc[...] = h_last
    c_sc[...] = c_last

    @pl.when(chunk == pl.num_programs(0) - 1)
    def _():
        h_out_ref[...] = h_last
        c_out_ref[...] = c_last


def _lstm_recurrence(z_tbg, whh_packed_bf16, Tc, out_dtype):
    """z_tbg: (T, Bp, 4*Hp) f32;  whh_packed_bf16: (Hp, 4*Hp) bf16."""
    T, Bp, G = z_tbg.shape
    Hp = G // 4
    out_itemsize = jnp.dtype(out_dtype).itemsize

    # Explicit VMEM budget (double-buffered z/out chunks, single-buffered weights,
    # carries and final-state blocks) with 2x headroom, capped below scoped defaults.
    vmem_bytes = (2 * Tc * Bp * G * 4
                  + 2 * Tc * Bp * Hp * out_itemsize
                  + Hp * G * 2
                  + 2 * Bp * Hp * 4
                  + 2 * 2 * Bp * Hp * 4)
    vmem_limit = int(min(max(2 * vmem_bytes, 4 * 2 ** 20), 32 * 2 ** 20))

    return pl.pallas_call(
        _recurrence_kernel,
        out_shape=(jax.ShapeDtypeStruct((T, Bp, Hp), out_dtype),
                   jax.ShapeDtypeStruct((Bp, Hp), jnp.float32),
                   jax.ShapeDtypeStruct((Bp, Hp), jnp.float32)),
        grid_spec=pltpu.PrefetchScalarGridSpec(
            num_scalar_prefetch=0,
            grid=(T // Tc,),
            in_specs=[
                pl.BlockSpec((Tc, Bp, G), lambda c: (c, 0, 0)),
                pl.BlockSpec(memory_space=pl.ANY),     # W_hh stays in HBM; copied once
            ],
            out_specs=[
                pl.BlockSpec((Tc, Bp, Hp), lambda c: (c, 0, 0)),
                pl.BlockSpec((Bp, Hp), lambda c: (0, 0)),
                pl.BlockSpec((Bp, Hp), lambda c: (0, 0)),
            ],
            scratch_shapes=[
                pltpu.VMEM((Hp, G), jnp.bfloat16),     # single-buffered W_hh^T
                pltpu.SemaphoreType.DMA(()),
                pltpu.VMEM((Bp, Hp), jnp.float32),     # h carry
                pltpu.VMEM((Bp, Hp), jnp.float32),     # c carry
            ]),
        compiler_params=pltpu.CompilerParams(
            dimension_semantics=("arbitrary",),        # sequential recurrence
            vmem_limit_bytes=vmem_limit),
    )(z_tbg, whh_packed_bf16)


# ------------------------------------------------------------------------------------
# Weight packing (PyTorch layout -> lane-aligned, gate-padded layout)
# ------------------------------------------------------------------------------------
def _round_up(x, m):
    return (x + m - 1) // m * m


def _pack_ih(w_ih, b_ih, b_hh, Hp, din_pad):
    """w_ih: (4H, Din) -> (din_pad, 4*Hp) bf16;  bias -> (1, 4*Hp) f32."""
    H4, Din = w_ih.shape
    H = H4 // 4
    w = jnp.transpose(w_ih.reshape(4, H, Din), (2, 0, 1))        # (Din, 4, H)
    w = jnp.pad(w, ((0, din_pad - Din), (0, 0), (0, Hp - H)))     # (din_pad, 4, Hp)
    b = jnp.pad((b_ih + b_hh).reshape(4, H), ((0, 0), (0, Hp - H)))
    return (w.reshape(din_pad, 4 * Hp).astype(jnp.bfloat16),
            b.reshape(1, 4 * Hp).astype(jnp.float32))


def _pack_hh(w_hh, Hp):
    """w_hh: (4H, H) -> (Hp, 4*Hp) bf16."""
    H4, H = w_hh.shape
    w = jnp.transpose(w_hh.reshape(4, H, H), (2, 0, 1))           # (H_in, 4, H_out)
    w = jnp.pad(w, ((0, Hp - H), (0, 0), (0, Hp - H)))            # (Hp, 4, Hp)
    return w.reshape(Hp, 4 * Hp).astype(jnp.bfloat16)


# ------------------------------------------------------------------------------------
# EncoderLSTM.forward equivalent (eval mode)
# ------------------------------------------------------------------------------------
def encoder_lstm_forward(x_btd, params, *, time_chunk=32):
    """x_btd: (B, T, input_size) batch_first.  Returns (outputs, hidden, cell)."""
    B, T, _ = x_btd.shape
    H = params[0]["w_hh"].shape[1]
    Bp = _round_up(B, 8)          # pad batch to a full sublane group
    Hp = _round_up(H, 128)        # pad hidden to a full lane tile (lane-dense stores)
    Tc = math.gcd(T, time_chunk)  # time-chunk size that divides T

    x = jnp.transpose(x_btd.astype(jnp.float32), (1, 0, 2))       # (T, B, D) time-major
    x = jnp.pad(x, ((0, 0), (0, Bp - B), (0, 0)))                 # (T, Bp, D)

    n_layers = len(params)
    layer_in = x
    hs, cs = [], []
    for li, p in enumerate(params):
        Din = layer_in.shape[-1]
        wih_p, bias_p = _pack_ih(p["w_ih"], p["b_ih"], p["b_hh"], Hp, Din)
        whh_p = _pack_hh(p["w_hh"], Hp)

        # 1) hoisted input projection: one large (T*Bp, Din) x (Din, 4*Hp) MXU matmul
        x2d = layer_in.reshape(T * Bp, Din).astype(jnp.bfloat16)
        z = _input_projection(x2d, wih_p, bias_p).reshape(T, Bp, 4 * Hp)

        # 2) sequential recurrence over time chunks
        out_dtype = jnp.float32 if li == n_layers - 1 else jnp.bfloat16
        layer_out, h_T, c_T = _lstm_recurrence(z, whh_p, Tc, out_dtype)

        hs.append(h_T[:B, :H])
        cs.append(c_T[:B, :H])
        layer_in = layer_out          # bf16 inter-layer activations
        # (dropout between layers is identity in eval mode)

    outputs = jnp.transpose(layer_in[:, :B, :H], (1, 0, 2))       # (B, T, H)
    hidden = jnp.stack(hs, axis=0)                                # (L, B, H)
    cell = jnp.stack(cs, axis=0)                                  # (L, B, H)
    return outputs, hidden, cell


def init_lstm_params(key, input_size, hidden_size, num_layers):
    """Deterministic PyTorch-style init: U(-1/sqrt(H), 1/sqrt(H))."""
    bound = 1.0 / jnp.sqrt(jnp.float32(hidden_size))
    params = []
    for layer in range(num_layers):
        d_in = input_size if layer == 0 else hidden_size
        key, k1, k2, k3, k4 = jax.random.split(key, 5)
        params.append({
            "w_ih": jax.random.uniform(k1, (4 * hidden_size, d_in),
                                       jnp.float32, -bound, bound),
            "w_hh": jax.random.uniform(k2, (4 * hidden_size, hidden_size),
                                       jnp.float32, -bound, bound),
            "b_ih": jax.random.uniform(k3, (4 * hidden_size,),
                                       jnp.float32, -bound, bound),
            "b_hh": jax.random.uniform(k4, (4 * hidden_size,),
                                       jnp.float32, -bound, bound),
        })
    return params


def _reference_lstm(x_btd, params):
    """Pure-JAX reference using the same bf16 matmul-operand quantization as the
    kernel (weights / x / h cast to bf16, fp32 accumulation & gate math)."""
    B, T, _ = x_btd.shape
    H = params[0]["w_hh"].shape[1]
    layer_in = x_btd.astype(jnp.float32)
    hs, cs = [], []
    for p in params:
        w_ih = p["w_ih"].astype(jnp.bfloat16)
        w_hh = p["w_hh"].astype(jnp.bfloat16)
        b = (p["b_ih"] + p["b_hh"]).astype(jnp.float32)

        def step(carry, x_t):
            h, c = carry
            z = (jnp.dot(x_t.astype(jnp.bfloat16), w_ih.T,
                         preferred_element_type=jnp.float32)
                 + jnp.dot(h.astype(jnp.bfloat16), w_hh.T,
                           preferred_element_type=jnp.float32)
                 + b)
            i = jax.nn.sigmoid(z[:, 0 * H:1 * H])
            f = jax.nn.sigmoid(z[:, 1 * H:2 * H])
            g = jnp.tanh(z[:, 2 * H:3 * H])
            o = jax.nn.sigmoid(z[:, 3 * H:4 * H])
            c = f * c + i * g
            h = o * jnp.tanh(c)
            return (h, c), h

        init = (jnp.zeros((B, H), jnp.float32), jnp.zeros((B, H), jnp.float32))
        (h_T, c_T), out_tbh = jax.lax.scan(step, init,
                                           jnp.transpose(layer_in, (1, 0, 2)))
        layer_in = jnp.transpose(out_tbh, (1, 0, 2))
        hs.append(h_T)
        cs.append(c_T)
    return layer_in, jnp.stack(hs, 0), jnp.stack(cs, 0)


if __name__ == "__main__":
    B, T = 2, 8
    input_size, hidden_size, num_layers = 4, 32, 2

    key = jax.random.PRNGKey(0)
    key, kx = jax.random.split(key)
    x = jax.random.normal(kx, (B, T, input_size), jnp.float32)
    params = init_lstm_params(key, input_size, hidden_size, num_layers)

    outputs, hidden, cell = encoder_lstm_forward(x, params)
    jax.block_until_ready((outputs, hidden, cell))

    assert outputs.shape == (B, T, hidden_size)
    assert hidden.shape == (num_layers, B, hidden_size)
    assert cell.shape == (num_layers, B, hidden_size)

    ref_out, ref_h, ref_c = _reference_lstm(x, params)
    # bf16 matmul operands in both kernel and reference -> tight tolerance is valid.
    assert jnp.allclose(outputs, ref_out, atol=5e-3, rtol=5e-3)
    assert jnp.allclose(hidden, ref_h, atol=5e-3, rtol=5e-3)
    assert jnp.allclose(cell, ref_c, atol=5e-3, rtol=5e-3)

    print("KERNEL_OK")
</pallas_src>

<mosaic_0001>
module attributes {stable_mosaic.version = 11 : i64} {
  func.func @_in_proj_kernel(%arg0: i32, %arg1: memref<64x4xbf16, #tpu.memory_space<vmem>>, %arg2: memref<4x512xbf16, #tpu.memory_space<vmem>>, %arg3: memref<1x512xf32, #tpu.memory_space<vmem>>, %arg4: memref<64x512xf32, #tpu.memory_space<vmem>>) attributes {dimension_semantics = [#tpu.dimension_semantics<parallel>], iteration_bounds = array<i64: 1>, scalar_prefetch = 0 : i64, scratch_operands = 0 : i64, tpu.core_type = #tpu.core_type<tc>, window_params = [{transform_indices = @transform_0, window_bounds = array<i64: 64, 4>}, {pipeline_mode = #tpu.pipeline_mode<synchronous>, transform_indices = @transform_1, window_bounds = array<i64: 4, 512>}, {pipeline_mode = #tpu.pipeline_mode<synchronous>, transform_indices = @transform_2, window_bounds = array<i64: 1, 512>}, {transform_indices = @transform_3, window_bounds = array<i64: 64, 512>}]} {
    %c0 = arith.constant 0 : index
    %c0_0 = arith.constant 0 : index
    %0 = vector.load %arg1[%c0, %c0_0] : memref<64x4xbf16, #tpu.memory_space<vmem>>, vector<64x4xbf16>
    %c0_1 = arith.constant 0 : index
    %c0_2 = arith.constant 0 : index
    %1 = vector.load %arg2[%c0_1, %c0_2] : memref<4x512xbf16, #tpu.memory_space<vmem>>, vector<4x512xbf16>
    %cst = arith.constant dense<0.000000e+00> : vector<64x512xf32>
    %2 = tpu.matmul %0, %1, %cst {dimension_numbers = #tpu.dot_dimension_numbers<[1], [0], [0], [1], [0, 0, 1, 1], [], []>} : vector<64x4xbf16>, vector<4x512xbf16>, vector<64x512xf32> -> vector<64x512xf32>
    %c0_3 = arith.constant 0 : index
    %c0_4 = arith.constant 0 : index
    %3 = vector.load %arg3[%c0_3, %c0_4] : memref<1x512xf32, #tpu.memory_space<vmem>>, vector<1x512xf32>
    %4 = vector.broadcast %3 : vector<1x512xf32> to vector<64x512xf32>
    %5 = arith.addf %2, %4 : vector<64x512xf32>
    %c0_5 = arith.constant 0 : index
    %c0_6 = arith.constant 0 : index
    %6 = vector.load %arg4[%c0_5, %c0_6] : memref<64x512xf32, #tpu.memory_space<vmem>>, vector<64x512xf32>
    tpu.vector_store %arg4[%c0_5, %c0_6], %5 {strides = array<i32>} : memref<64x512xf32, #tpu.memory_space<vmem>>, vector<64x512xf32>,
    return
  }
  func.func @transform_0(%arg0: i32) -> (i32, i32) {
    %c0_i32 = arith.constant 0 : i32
    %c0_i32_0 = arith.constant 0 : i32
    return %arg0, %c0_i32 : i32, i32
  }
  func.func @transform_1(%arg0: i32) -> (i32, i32) {
    %c0_i32 = arith.constant 0 : i32
    %c0_i32_0 = arith.constant 0 : i32
    %c0_i32_1 = arith.constant 0 : i32
    return %c0_i32, %c0_i32_0 : i32, i32
  }
  func.func @transform_2(%arg0: i32) -> (i32, i32) {
    %c0_i32 = arith.constant 0 : i32
    %c0_i32_0 = arith.constant 0 : i32
    %c0_i32_1 = arith.constant 0 : i32
    return %c0_i32, %c0_i32_0 : i32, i32
  }
  func.func @transform_3(%arg0: i32) -> (i32, i32) {
    %c0_i32 = arith.constant 0 : i32
    %c0_i32_0 = arith.constant 0 : i32
    return %arg0, %c0_i32 : i32, i32
  }
}

</mosaic_0001>

<bundles_post_ra>
// kernel: tpu_custom_call.1
= control target key start
LH: loop header
LB: loop body
LE: loop exit
PB: predicated region body
PF: predicated region fallthrough
CT: control target
= control target key end

     0   :  { %v27_v1 = vlaneseq  ;;  %v351_v2 = vmov 1983009808   ;;  %v352_v4 = vmov 0   ;;  %s445_s0 = inlined_call_operand.vmem [shape: bf16[64,4], index: 0, kind: input, shape index: {}]   ;;  %s446_s1 = inlined_call_operand.vmem [shape: bf16[4,512], index: 1, kind: input, shape index: {}]   ;;  %s447_s2 = inlined_call_operand.vmem [shape: f32[1,512], index: 2, kind: input, shape index: {}]   ;;  %s448_s3 = inlined_call_operand.hbm [shape: f32[64,512], index: 3, kind: output, shape index: {}]  }
   0x1   :  { %v24_v0 = vld [vmem:[%s446_s1] sm:$0xff]  ;;  %v70_v3 = vunpack.c.l.s4 %v351_v2  ;;  %143 = vmatprep.mubr.bf16.mxu0 %v352_v4  ;;  %216 = vmatprep.mubr.bf16.mxu1 %v352_v4 }
   0x2   :  { %v28_v5 = vshrl.u32 %v27_v1, 7  ;;  %v68_v7 = vcombine.high %v24_v0, %v24_v0 }
   0x3   :  { %v71_v6 = vunpack.c.0.s8 %v70_v3 }
   0x5   :  { %v74_v8 = vsub.s32 %v71_v6, %v28_v5 }
   0x6   :  { %8 = vsyncpa [#allocation3], 0  ;;  %vm98_vm0 = vcmask 1041408   ;;  %v325_v15 = vld [vmem:[%s445_s0] sm:$0xff]   ;;  %vm85_vm1 = vcmask 31744   ;;  %v326_v16 = vld [vmem:[%s445_s0 + $0x8] sm:$0xff]  }
   0x7   :  { %v75_v9 = vrot.slane %v24_v0, %v74_v8  ;;  %v82_v10 = vrot.slane %v68_v7, %v74_v8  ;;  %v327_v17 = vld [vmem:[%s445_s0 + $0x10] sm:$0xff]   ;;  %v328_v18 = vld [vmem:[%s445_s0 + $0x18] sm:$0xff]   ;;  %v29_v19 = vsub.s32 0, %v28_v5  ;;  %v37_v20 = vsub.s32 2, %v28_v5  ;;  %v25_v21 = vld [vmem:[%s447_s2] sm:$0xf] }
   0x8   :  { %v33_v22 = vsub.s32 1, %v28_v5  ;;  %v41_v23 = vsub.s32 3, %v28_v5  ;;  %s353_s0 = smov [#allocation2]  }
   0x9   :  { %v83_v11 = vcombine.high %v75_v9, %v75_v9  ;;  %v84_v12 = vcombine.high %v82_v10, %v82_v10  ;;  %v100_v13 = vsel %vm98_vm0, %v75_v9, 0  ;;  %v106_v14 = vsel %vm98_vm0, %v82_v10, 0  ;;  %s294_s2 = sshll.u32 %s353_s0, 4  ;;  %s295_s2 = int_to_ptr.vmem [resolvable:$true] %s294_s2 }
   0xa   :  { %v402_v24 = vrot.slane %v25_v21, %v29_v19  ;;  %v404_v25 = vrot.slane %v25_v21, %v37_v20  ;;  %v406_v26 = vrot.slane %v25_v21, %v33_v22  ;;  %v408_v27 = vrot.slane %v25_v21, %v41_v23  ;;  %s329_s23 = scalar_lea.vmem %s295_s2, 4096  ;;  %p334_p1 = scmp.lt.s32.totalorder %s295_s2, %s295_s2 }
   0xb   :  { %309 = vmatprep.subr.msk.bf16.mxu0 %vm98_vm0, %v83_v11  ;;  %314 = vmatprep.subr.msk.bf16.mxu1 %vm98_vm0, %v84_v12  ;;  %p330_p0 = scmp.ne.s32.totalorder %s295_s2, %s329_s23  ;;  %p335_p2 = scmp.lt.s32.totalorder %s329_s23, %s329_s23 }
   0xc   :  { %126 = vmatpush1.bf16.msra.mxu0 %v100_v13  ;;  %199 = vmatpush1.bf16.msra.mxu1 %v106_v14 }
   0xd   :  { %p336_p3 = por %p335_p2, %p334_p1 }
   0xf   :  { %310 = vmatmul.mubr.msk.bf16.vlgmr.msra.gmra.mxu0 %vm85_vm1, %v325_v15  ;;  %315 = vmatmul.mubr.msk.bf16.vlgmr.msra.gmra.mxu1 %vm85_vm1, %v325_v15  ;;  %p337_p4 = pnand %p336_p3, %p330_p0 }
  0x10   :  { %153 = vmatprep.mubr.bf16.mxu0 %v352_v4  ;;  %226 = vmatprep.mubr.bf16.mxu1 %v352_v4 }
  0x17   :  { %311 = vmatmul.mubr.msk.bf16.gmra.mxu0 %vm85_vm1, %v326_v16  ;;  %316 = vmatmul.mubr.msk.bf16.gmra.mxu1 %vm85_vm1, %v326_v16 }
  0x18   :  { %163 = vmatprep.mubr.bf16.mxu0 %v352_v4  ;;  %236 = vmatprep.mubr.bf16.mxu1 %v352_v4 }
  0x1f   :  { %312 = vmatmul.mubr.msk.bf16.gmra.mxu0 %vm85_vm1, %v327_v17  ;;  %317 = vmatmul.mubr.msk.bf16.gmra.mxu1 %vm85_vm1, %v327_v17 }
  0x20   :  { %173 = vmatprep.mubr.bf16.mxu0 %v352_v4  ;;  %246 = vmatprep.mubr.bf16.mxu1 %v352_v4 }
  0x27   :  { %313 = vmatmul.mubr.msk.bf16.gmra.mxu0 %vm85_vm1, %v328_v18  ;;  %318 = vmatmul.mubr.msk.bf16.gmra.mxu1 %vm85_vm1, %v328_v18 }
  0xcf   :  { %v145_v28 = vpop.f32.mrf.mxu0  ;;  %v218_v29 = vpop.f32.mrf.mxu1 }
  0xd0   :  { %v146_v30 = vadd.f32 %v145_v28, %v402_v24  ;;  %v219_v31 = vadd.f32 %v218_v29, %v404_v25 }
  0xd1   :  { %v147_v32 = vpop.f32.mrf.mxu0  ;;  %v220_v33 = vpop.f32.mrf.mxu1 }
  0xd2   :  { %257 = vst [vmem:[#allocation2] sm:$0xff] %v146_v30  ;;  %259 = vst [vmem:[#allocation2 + $0x10] sm:$0xff] %v219_v31  ;;  %v148_v34 = vadd.f32 %v147_v32, %v406_v26  ;;  %v221_v35 = vadd.f32 %v220_v33, %v408_v27 }
  0xd3   :  { %v149_v36 = vpop.f32.mrf.mxu0  ;;  %v222_v37 = vpop.f32.mrf.mxu1 }
  0xd4   :  { %258 = vst [vmem:[#allocation2 + $0x8] sm:$0xff] %v148_v34  ;;  %260 = vst [vmem:[#allocation2 + $0x18] sm:$0xff] %v221_v35  ;;  %v150_v38 = vadd.f32 %v149_v36, %v402_v24  ;;  %v223_v39 = vadd.f32 %v222_v37, %v404_v25 }
  0xd5   :  { %v151_v40 = vpop.f32.mrf.mxu0  ;;  %v224_v41 = vpop.f32.mrf.mxu1 }
  0xd6   :  { %261 = vst [vmem:[#allocation2 + $0x20] sm:$0xff] %v150_v38  ;;  %263 = vst [vmem:[#allocation2 + $0x30] sm:$0xff] %v223_v39  ;;  %v152_v42 = vadd.f32 %v151_v40, %v406_v26  ;;  %v225_v43 = vadd.f32 %v224_v41, %v408_v27 }
  0xd7   :  { %v155_v44 = vpop.f32.mrf.mxu0  ;;  %v228_v45 = vpop.f32.mrf.mxu1 }
  0xd8   :  { %262 = vst [vmem:[#allocation2 + $0x28] sm:$0xff] %v152_v42  ;;  %264 = vst [vmem:[#allocation2 + $0x38] sm:$0xff] %v225_v43  ;;  %v156_v46 = vadd.f32 %v155_v44, %v402_v24  ;;  %v229_v47 = vadd.f32 %v228_v45, %v404_v25 }
  0xd9   :  { %v157_v48 = vpop.f32.mrf.mxu0  ;;  %v230_v49 = vpop.f32.mrf.mxu1 }
  0xda   :  { %265 = vst [vmem:[#allocation2 + $0x40] sm:$0xff] %v156_v46  ;;  %267 = vst [vmem:[#allocation2 + $0x50] sm:$0xff] %v229_v47  ;;  %v158_v50 = vadd.f32 %v157_v48, %v406_v26  ;;  %v231_v51 = vadd.f32 %v230_v49, %v408_v27 }
  0xdb   :  { %v159_v52 = vpop.f32.mrf.mxu0  ;;  %v232_v53 = vpop.f32.mrf.mxu1 }
  0xdc   :  { %266 = vst [vmem:[#allocation2 + $0x48] sm:$0xff] %v158_v50  ;;  %268 = vst [vmem:[#allocation2 + $0x58] sm:$0xff] %v231_v51  ;;  %v160_v54 = vadd.f32 %v159_v52, %v402_v24  ;;  %v233_v55 = vadd.f32 %v232_v53, %v404_v25 }
  0xdd   :  { %v161_v56 = vpop.f32.mrf.mxu0  ;;  %v234_v57 = vpop.f32.mrf.mxu1 }
  0xde   :  { %269 = vst [vmem:[#allocation2 + $0x60] sm:$0xff] %v160_v54  ;;  %271 = vst [vmem:[#allocation2 + $0x70] sm:$0xff] %v233_v55  ;;  %v162_v58 = vadd.f32 %v161_v56, %v406_v26  ;;  %v235_v59 = vadd.f32 %v234_v57, %v408_v27 }
  0xdf   :  { %v165_v60 = vpop.f32.mrf.mxu0  ;;  %v238_v61 = vpop.f32.mrf.mxu1 }
  0xe0   :  { %270 = vst [vmem:[#allocation2 + $0x68] sm:$0xff] %v162_v58  ;;  %272 = vst [vmem:[#allocation2 + $0x78] sm:$0xff] %v235_v59  ;;  %v166_v62 = vadd.f32 %v165_v60, %v402_v24  ;;  %v239_v63 = vadd.f32 %v238_v61, %v404_v25 }
  0xe1   :  { %v167_v0 = vpop.f32.mrf.mxu0  ;;  %v240_v1 = vpop.f32.mrf.mxu1 }
  0xe2   :  { %273 = vst [vmem:[#allocation2 + $0x80] sm:$0xff] %v166_v62  ;;  %275 = vst [vmem:[#allocation2 + $0x90] sm:$0xff] %v239_v63  ;;  %v168_v2 = vadd.f32 %v167_v0, %v406_v26  ;;  %v241_v3 = vadd.f32 %v240_v1, %v408_v27 }
  0xe3   :  { %v169_v4 = vpop.f32.mrf.mxu0  ;;  %v242_v5 = vpop.f32.mrf.mxu1 }
  0xe4   :  { %274 = vst [vmem:[#allocation2 + $0x88] sm:$0xff] %v168_v2  ;;  %276 = vst [vmem:[#allocation2 + $0x98] sm:$0xff] %v241_v3  ;;  %v170_v6 = vadd.f32 %v169_v4, %v402_v24  ;;  %v243_v7 = vadd.f32 %v242_v5, %v404_v25 }
  0xe5   :  { %v171_v8 = vpop.f32.mrf.mxu0  ;;  %v244_v9 = vpop.f32.mrf.mxu1 }
  0xe6   :  { %277 = vst [vmem:[#allocation2 + $0xa0] sm:$0xff] %v170_v6  ;;  %279 = vst [vmem:[#allocation2 + $0xb0] sm:$0xff] %v243_v7  ;;  %v172_v10 = vadd.f32 %v171_v8, %v406_v26  ;;  %v245_v11 = vadd.f32 %v244_v9, %v408_v27 }
  0xe7   :  { %v175_v12 = vpop.f32.mrf.mxu0  ;;  %v248_v13 = vpop.f32.mrf.mxu1 }
  0xe8   :  { %278 = vst [vmem:[#allocation2 + $0xa8] sm:$0xff] %v172_v10  ;;  %280 = vst [vmem:[#allocation2 + $0xb8] sm:$0xff] %v245_v11  ;;  %v176_v14 = vadd.f32 %v175_v12, %v402_v24  ;;  %v249_v15 = vadd.f32 %v248_v13, %v404_v25 }
  0xe9   :  { %v177_v16 = vpop.f32.mrf.mxu0  ;;  %v250_v17 = vpop.f32.mrf.mxu1 }
  0xea   :  { %281 = vst [vmem:[#allocation2 + $0xc0] sm:$0xff] %v176_v14  ;;  %283 = vst [vmem:[#allocation2 + $0xd0] sm:$0xff] %v249_v15  ;;  %v178_v18 = vadd.f32 %v177_v16, %v406_v26  ;;  %v251_v19 = vadd.f32 %v250_v17, %v408_v27 }
  0xeb   :  { %v179_v20 = vpop.f32.mrf.mxu0  ;;  %v252_v21 = vpop.f32.mrf.mxu1 }
  0xec   :  { %282 = vst [vmem:[#allocation2 + $0xc8] sm:$0xff] %v178_v18  ;;  %284 = vst [vmem:[#allocation2 + $0xd8] sm:$0xff] %v251_v19  ;;  %v180_v22 = vadd.f32 %v179_v20, %v402_v24  ;;  %v253_v23 = vadd.f32 %v252_v21, %v404_v25 }
  0xed   :  { %v181_v28 = vpop.f32.mrf.mxu0  ;;  %v254_v29 = vpop.f32.mrf.mxu1 }
  0xee   :  { %285 = vst [vmem:[#allocation2 + $0xe0] sm:$0xff] %v180_v22  ;;  %287 = vst [vmem:[#allocation2 + $0xf0] sm:$0xff] %v253_v23  ;;  %v182_v30 = vadd.f32 %v181_v28, %v406_v26  ;;  %v255_v31 = vadd.f32 %v254_v29, %v408_v27 }
  0xf0   :  { %286 = vst [vmem:[#allocation2 + $0xe8] sm:$0xff] %v182_v30  ;;  %288 = vst [vmem:[#allocation2 + $0xf8] sm:$0xff] %v255_v31 }
  0xf1   :  { %340 = shalt.err (!%p337_p4)
}
  0xf2   :  { %s354_s24 = smov 512   ;;  %s355_s25 = smov 32  }
  0xf3   :  { %300 = dma.vmem_to_hbm [thread:$0]  %s295_s2, 4096, %s448_s3, [#allocation3], %s354_s24, %s354_s24, %s355_s25  }
  0xf4   :  { %349 = dma.done.wait [#allocation3], 4096  }
  0xf5   :  { %350 = vsyncadd [#allocation3], 4294963200 }
  0xf6   :  { %304 = vsyncpa [#allocation3], 1 }

</bundles_post_ra>
